<compile_context>
chip_gen: v7x
topology: tpu7x:2x2x1
jax: 0.10.0
libtpu: 0.0.40
codegen_flags: <defaults>
</compile_context>

<pallas_src>
import functools

import jax
import jax.numpy as jnp
from jax import lax
from jax.experimental import pallas as pl
from jax.experimental.pallas import tpu as pltpu


def _sagan_kernel(x_bf_ref, x_res_ref, w_qkv_ref, w_o_ref, out_ref,
                  k_ref, q_ref, v_ref, *, crp, tq):
    """Grid = (batch, query_tile).

    x_bf_ref  : (1, C, HW)  bf16  channel-first slab (QKV projection input)
    x_res_ref : (1, C, tq)  f32   residual tile (exact f32 path)
    w_qkv_ref : (3*crp, C)  bf16  fused, zero-padded K/Q/V 1x1-conv weights
    w_o_ref   : (C, crp)    bf16  op_transform weight with `scale` folded in
    out_ref   : (1, C, tq)  f32   output tile (channel-first, lane-dense)
    k_ref     : (crp, HW)   bf16  scratch: key,   channel-first (lane-dense)
    q_ref     : (crp, HW)   bf16  scratch: query, channel-first (lane-dense)
    v_ref     : (crp, HW)   bf16  scratch: value, channel-first (lane-dense)
    """
    qi = pl.program_id(1)

    # Project QKV once per batch element (first query tile of the sweep).
    # Three separate dots: no (3*crp, HW) f32 transient, no transposes.
    @pl.when(qi == 0)
    def _():
        x_bf = x_bf_ref[0]                                          # (C, HW)
        k_ref[...] = jnp.dot(w_qkv_ref[0:crp, :], x_bf,
                             preferred_element_type=jnp.float32
                             ).astype(jnp.bfloat16)
        q_ref[...] = jnp.dot(w_qkv_ref[crp:2 * crp, :], x_bf,
                             preferred_element_type=jnp.float32
                             ).astype(jnp.bfloat16)
        v_ref[...] = jnp.dot(w_qkv_ref[2 * crp:3 * crp, :], x_bf,
                             preferred_element_type=jnp.float32
                             ).astype(jnp.bfloat16)

    off = pl.multiple_of(qi * tq, tq)
    q_tile = q_ref[:, pl.ds(off, tq)]                               # (crp, tq)

    # scores_T[j, i] = sum_c q[c, off+j] * k[c, i]   ("tn" dot) -> (tq, HW)
    scores = lax.dot_general(q_tile, k_ref[...],
                             (((0,), (0,)), ((), ())),
                             preferred_element_type=jnp.float32)

    # Exact softmax over the key axis (== torch softmax(dim=1)), kept in f32.
    # TODO(synk): on v6e/v7x the subtract+exp could run in bf16 (bf16 VPU/EUP).
    m = jnp.max(scores, axis=-1, keepdims=True)
    e = jnp.exp(scores - m)                                         # (tq, HW)
    denom = jnp.sum(e, axis=-1, keepdims=True)                      # (tq, 1)

    # Deferred normalization: PV matmul on the *unnormalized* bf16 exponentials
    # ("nt" dot, contracting the key axis), then scale the small (tq, crp)
    # result by 1/denom instead of scaling the whole (tq, HW) block.
    pv = lax.dot_general(e.astype(jnp.bfloat16), v_ref[...],
                         (((1,), (1,)), ((), ())),
                         preferred_element_type=jnp.float32)        # (tq, crp)
    out_t = (pv * pl.reciprocal(denom, approx=True)).astype(jnp.bfloat16)

    # Output projection (learnable scale already folded into w_o) -> (C, tq).
    proj = lax.dot_general(w_o_ref[...], out_t,
                           (((1,), (1,)), ((), ())),
                           preferred_element_type=jnp.float32)

    # Residual add on the exact f32 tile.
    out_ref[0] = (proj + x_res_ref[0]).astype(out_ref.dtype)


def sagan_attention_pallas(x_nchw, w_transform, w_op, scale,
                           reduction_ratio=8, tq=128):
    """x_nchw: (B, C, H, W) float32.  Returns (B, C, H, W) float32.

    tq: query-tile width (multiple of 128).  128 is safe on all generations;
    on v6e (128 MiB VMEM, 256-wide MXU) tq=256 is usually better if HW % 256 == 0.
    """
    B, C, H, W = x_nchw.shape
    assert C % reduction_ratio == 0
    Cr = C // reduction_ratio
    HW = H * W
    # Pad each QKV chunk to a multiple of 16 rows (bf16 sublane packing).
    Crp = max(16, ((Cr + 15) // 16) * 16)
    if HW % tq != 0:
        tq = 128 if HW % 128 == 0 else HW    # single-tile fallback for odd HW
    assert HW % tq == 0

    # NCHW -> (B, C, HW): pure reshape, no transpose.  Split operand:
    #   * bf16 slab for the QKV projection (half the VMEM/DMA of f32),
    #   * f32 kept for the exact residual path (fetched as (C, tq) tiles).
    x_f32 = x_nchw.reshape(B, C, HW).astype(jnp.float32)
    x_bf16 = x_f32.astype(jnp.bfloat16)

    # Conv weights (O, I, 1, 1) -> matmul weights, fused + zero-padded + bf16.
    wt = w_transform[:, :, 0, 0]                                    # (3*Cr, C)
    wk, wq, wv = wt[:Cr], wt[Cr:2 * Cr], wt[2 * Cr:]

    def _pad_rows(wm):                                              # (Cr,C)->(Crp,C)
        if Crp == Cr:
            return wm
        return jnp.concatenate(
            [wm, jnp.zeros((Crp - Cr, C), wm.dtype)], axis=0)

    w_qkv = jnp.concatenate(
        [_pad_rows(wk), _pad_rows(wq), _pad_rows(wv)],
        axis=0).astype(jnp.bfloat16)                                # (3*Crp, C)

    wo = w_op[:, :, 0, 0]                                           # (C, Cr)
    if Crp != Cr:
        wo = jnp.concatenate(
            [wo, jnp.zeros((C, Crp - Cr), wo.dtype)], axis=1)
    # Fold the learnable residual scale into the projection weight (one-time
    # (C, Crp) multiply) -- removes the per-step (C, tq) broadcast multiply.
    wo = (jnp.reshape(scale, ()).astype(jnp.float32) * wo).astype(jnp.bfloat16)

    # Explicit scoped-VMEM budget: bf16 x slab (double-buffered), 3 scratch
    # slabs, live f32 score/exp intermediates, residual/out tiles, weights.
    vmem_need = (
        2 * C * HW * 2                      # bf16 x slab (double-buffered)
        + 3 * Crp * HW * 2                  # K / Q / V scratch
        + 3 * tq * HW * 4                   # scores / exp f32 intermediates
        + 4 * C * tq * 4                    # residual-in + out tiles (2-buf)
        + 2 * (3 * Crp * C + C * Crp) * 2   # weights (2-buf)
    )
    vmem_limit = int(min(max(2 * vmem_need, 16 * 1024 * 1024),
                         48 * 1024 * 1024))  # safe ceiling on v5e/v6e/v7x

    grid = (B, HW // tq)
    out = pl.pallas_call(
        functools.partial(_sagan_kernel, crp=Crp, tq=tq),
        out_shape=jax.ShapeDtypeStruct((B, C, HW), jnp.float32),
        grid=grid,
        in_specs=[
            pl.BlockSpec((1, C, HW), lambda b, q: (b, 0, 0)),       # x (bf16)
            pl.BlockSpec((1, C, tq), lambda b, q: (b, 0, q)),       # x residual
            pl.BlockSpec((3 * Crp, C), lambda b, q: (0, 0)),        # fused QKV w
            pl.BlockSpec((C, Crp), lambda b, q: (0, 0)),            # scaled op w
        ],
        out_specs=pl.BlockSpec((1, C, tq), lambda b, q: (b, 0, q)),
        scratch_shapes=[
            pltpu.VMEM((Crp, HW), jnp.bfloat16),                    # K
            pltpu.VMEM((Crp, HW), jnp.bfloat16),                    # Q
            pltpu.VMEM((Crp, HW), jnp.bfloat16),                    # V
        ],
        compiler_params=pltpu.CompilerParams(
            # query axis carries the K/Q/V scratch -> must stay "arbitrary".
            # TODO(synk): hoist the QKV projection into its own pallas_call so
            # the query axis can be "parallel" (v7x megacore at small batch).
            dimension_semantics=("parallel", "arbitrary"),
            vmem_limit_bytes=vmem_limit),
    )(x_bf16, x_f32, w_qkv, wo)

    return out.reshape(B, C, H, W)


def sagan_attention_reference(x_nchw, w_transform, w_op, scale, reduction_ratio=8):
    """Pure-JAX (f32) replica of the PyTorch forward, for verification."""
    B, C, H, W = x_nchw.shape
    Cr = C // reduction_ratio
    transformed = jnp.einsum('bchw,oc->bohw', x_nchw, w_transform[:, :, 0, 0])
    key, query, value = (transformed[:, :Cr],
                         transformed[:, Cr:2 * Cr],
                         transformed[:, 2 * Cr:])
    key_f = key.reshape(B, Cr, H * W)
    query_f = query.reshape(B, Cr, H * W)
    value_f = value.reshape(B, Cr, H * W)
    scores = jnp.einsum('bci,bcj->bij', key_f, query_f)            # (B, HW, HW)
    attn = jax.nn.softmax(scores, axis=1)                          # torch dim=1
    out = jnp.einsum('bci,bij->bcj', value_f, attn)                # (B, Cr, HW)
    out = out.reshape(B, Cr, H, W)
    out = jnp.einsum('bchw,oc->bohw', out, w_op[:, :, 0, 0])
    return scale * out + x_nchw


if __name__ == "__main__":
    # in_channels divisible by reduction_ratio (=8): C=32 -> Cr=4; H=W=16 ->
    # HW=256, tq=128 -> 2 query tiles per batch (exercises tiling + scratch).
    B, C, H, W = 2, 32, 16, 16
    R = 8

    key0 = jax.random.PRNGKey(0)
    k_x, k_wt, k_wo = jax.random.split(key0, 3)

    x = jax.random.normal(k_x, (B, C, H, W), dtype=jnp.float32)
    # Conv2d weights: (out_channels, in_channels, 1, 1), no bias.
    w_transform = 0.1 * jax.random.normal(k_wt, (3 * (C // R), C, 1, 1),
                                          dtype=jnp.float32)
    w_op = 0.1 * jax.random.normal(k_wo, (C, C // R, 1, 1), dtype=jnp.float32)
    # nn.Parameter(torch.zeros(1)) inits to 0; use nonzero so the attention
    # path actually contributes to the checked output.
    scale = jnp.array([0.5], dtype=jnp.float32)

    fn = jax.jit(functools.partial(sagan_attention_pallas, reduction_ratio=R))
    y = jax.block_until_ready(fn(x, w_transform, w_op, scale))

    y_ref = sagan_attention_reference(x, w_transform, w_op, scale, R)
    assert y.shape == (B, C, H, W)
    # bf16 MXU inputs + approx reciprocal -> loosened tolerance vs f32 ref.
    assert jnp.allclose(y, y_ref, rtol=2e-2, atol=2e-2), "mismatch vs reference"

    print("KERNEL_OK")
</pallas_src>

<mosaic_0001>
module attributes {stable_mosaic.version = 11 : i64} {
  func.func @_sagan_kernel(%arg0: i32, %arg1: i32, %arg2: memref<1x32x256xbf16, #tpu.memory_space<vmem>>, %arg3: memref<1x32x128xf32, #tpu.memory_space<vmem>>, %arg4: memref<48x32xbf16, #tpu.memory_space<vmem>>, %arg5: memref<32x16xbf16, #tpu.memory_space<vmem>>, %arg6: memref<1x32x128xf32, #tpu.memory_space<vmem>>, %arg7: memref<16x256xbf16, #tpu.memory_space<vmem>>, %arg8: memref<16x256xbf16, #tpu.memory_space<vmem>>, %arg9: memref<16x256xbf16, #tpu.memory_space<vmem>>) attributes {dimension_semantics = [#tpu.dimension_semantics<parallel>, #tpu.dimension_semantics<arbitrary>], iteration_bounds = array<i64: 2, 2>, scalar_prefetch = 0 : i64, scratch_operands = 3 : i64, tpu.core_type = #tpu.core_type<tc>, window_params = [{transform_indices = @transform_0, window_bounds = array<i64: 1, 32, 256>}, {transform_indices = @transform_1, window_bounds = array<i64: 1, 32, 128>}, {pipeline_mode = #tpu.pipeline_mode<synchronous>, transform_indices = @transform_2, window_bounds = array<i64: 48, 32>}, {pipeline_mode = #tpu.pipeline_mode<synchronous>, transform_indices = @transform_3, window_bounds = array<i64: 32, 16>}, {transform_indices = @transform_4, window_bounds = array<i64: 1, 32, 128>}]} {
    %c0_i32 = arith.constant 0 : i32
    %0 = arith.cmpi eq, %arg1, %c0_i32 : i32
    %1 = arith.extui %0 : i1 to i32
    %c0_i32_0 = arith.constant 0 : i32
    %2 = arith.cmpi ne, %1, %c0_i32_0 : i32
    scf.if %2 {
      %c0_17 = arith.constant 0 : index
      %c0_18 = arith.constant 0 : index
      %c0_19 = arith.constant 0 : index
      %31 = vector.load %arg2[%c0_17, %c0_18, %c0_19] : memref<1x32x256xbf16, #tpu.memory_space<vmem>>, vector<1x32x256xbf16>
      %32 = vector.shape_cast %31 : vector<1x32x256xbf16> to vector<32x256xbf16>
      %c0_20 = arith.constant 0 : index
      %c0_21 = arith.constant 0 : index
      %33 = vector.load %arg4[%c0_20, %c0_21] : memref<48x32xbf16, #tpu.memory_space<vmem>>, vector<16x32xbf16>
      %cst_22 = arith.constant dense<0.000000e+00> : vector<16x256xf32>
      %34 = tpu.matmul %33, %32, %cst_22 {dimension_numbers = #tpu.dot_dimension_numbers<[1], [0], [0], [1], [0, 0, 1, 1], [], []>} : vector<16x32xbf16>, vector<32x256xbf16>, vector<16x256xf32> -> vector<16x256xf32>
      %35 = arith.truncf %34 : vector<16x256xf32> to vector<16x256xbf16>
      %c0_23 = arith.constant 0 : index
      %c0_24 = arith.constant 0 : index
      %36 = vector.load %arg7[%c0_23, %c0_24] : memref<16x256xbf16, #tpu.memory_space<vmem>>, vector<16x256xbf16>
      tpu.vector_store %arg7[%c0_23, %c0_24], %35 {strides = array<i32>} : memref<16x256xbf16, #tpu.memory_space<vmem>>, vector<16x256xbf16>,
      %c16 = arith.constant 16 : index
      %c0_25 = arith.constant 0 : index
      %37 = vector.load %arg4[%c16, %c0_25] : memref<48x32xbf16, #tpu.memory_space<vmem>>, vector<16x32xbf16>
      %cst_26 = arith.constant dense<0.000000e+00> : vector<16x256xf32>
      %38 = tpu.matmul %37, %32, %cst_26 {dimension_numbers = #tpu.dot_dimension_numbers<[1], [0], [0], [1], [0, 0, 1, 1], [], []>} : vector<16x32xbf16>, vector<32x256xbf16>, vector<16x256xf32> -> vector<16x256xf32>
      %39 = arith.truncf %38 : vector<16x256xf32> to vector<16x256xbf16>
      %c0_27 = arith.constant 0 : index
      %c0_28 = arith.constant 0 : index
      %40 = vector.load %arg8[%c0_27, %c0_28] : memref<16x256xbf16, #tpu.memory_space<vmem>>, vector<16x256xbf16>
      tpu.vector_store %arg8[%c0_27, %c0_28], %39 {strides = array<i32>} : memref<16x256xbf16, #tpu.memory_space<vmem>>, vector<16x256xbf16>,
      %c32 = arith.constant 32 : index
      %c0_29 = arith.constant 0 : index
      %41 = vector.load %arg4[%c32, %c0_29] : memref<48x32xbf16, #tpu.memory_space<vmem>>, vector<16x32xbf16>
      %cst_30 = arith.constant dense<0.000000e+00> : vector<16x256xf32>
      %42 = tpu.matmul %41, %32, %cst_30 {dimension_numbers = #tpu.dot_dimension_numbers<[1], [0], [0], [1], [0, 0, 1, 1], [], []>} : vector<16x32xbf16>, vector<32x256xbf16>, vector<16x256xf32> -> vector<16x256xf32>
      %43 = arith.truncf %42 : vector<16x256xf32> to vector<16x256xbf16>
      %c0_31 = arith.constant 0 : index
      %c0_32 = arith.constant 0 : index
      %44 = vector.load %arg9[%c0_31, %c0_32] : memref<16x256xbf16, #tpu.memory_space<vmem>>, vector<16x256xbf16>
      tpu.vector_store %arg9[%c0_31, %c0_32], %43 {strides = array<i32>} : memref<16x256xbf16, #tpu.memory_space<vmem>>, vector<16x256xbf16>,
    } else {
    }
    %c128_i32 = arith.constant 128 : i32
    %3 = arith.muli %arg1, %c128_i32 : i32
    %4 = tpu.assume_multiple %3, 128 : i32
    %c0 = arith.constant 0 : index
    %5 = arith.index_cast %4 : i32 to index
    %6 = vector.load %arg8[%c0, %5] : memref<16x256xbf16, #tpu.memory_space<vmem>>, vector<16x128xbf16>
    %c0_1 = arith.constant 0 : index
    %c0_2 = arith.constant 0 : index
    %7 = vector.load %arg7[%c0_1, %c0_2] : memref<16x256xbf16, #tpu.memory_space<vmem>>, vector<16x256xbf16>
    %cst = arith.constant dense<0.000000e+00> : vector<128x256xf32>
    %8 = tpu.matmul %6, %7, %cst {dimension_numbers = #tpu.dot_dimension_numbers<[0], [0], [1], [1], [0, 1, 1, 1], [], []>} : vector<16x128xbf16>, vector<16x256xbf16>, vector<128x256xf32> -> vector<128x256xf32>
    %cst_3 = arith.constant dense<0xFF800000> : vector<128xf32>
    %9 = vector.multi_reduction <maximumf>, %8, %cst_3 [1] : vector<128x256xf32> to vector<128xf32>
    %10 = vector.shape_cast %9 : vector<128xf32> to vector<128x1xf32>
    %11 = vector.broadcast %10 : vector<128x1xf32> to vector<128x256xf32>
    %12 = arith.subf %8, %11 : vector<128x256xf32>
    %13 = math.exp %12 : vector<128x256xf32>
    %cst_4 = arith.constant dense<0.000000e+00> : vector<128xf32>
    %14 = vector.multi_reduction <add>, %13, %cst_4 [1] : vector<128x256xf32> to vector<128xf32>
    %15 = vector.shape_cast %14 : vector<128xf32> to vector<128x1xf32>
    %16 = arith.truncf %13 : vector<128x256xf32> to vector<128x256xbf16>
    %c0_5 = arith.constant 0 : index
    %c0_6 = arith.constant 0 : index
    %17 = vector.load %arg9[%c0_5, %c0_6] : memref<16x256xbf16, #tpu.memory_space<vmem>>, vector<16x256xbf16>
    %cst_7 = arith.constant dense<0.000000e+00> : vector<128x16xf32>
    %18 = tpu.matmul %16, %17, %cst_7 {dimension_numbers = #tpu.dot_dimension_numbers<[1], [1], [0], [0], [0, 0, 1, 0], [], []>} : vector<128x256xbf16>, vector<16x256xbf16>, vector<128x16xf32> -> vector<128x16xf32>
    %19 = tpu.reciprocal %15 {approx = true} : vector<128x1xf32> -> vector<128x1xf32>
    %20 = vector.broadcast %19 : vector<128x1xf32> to vector<128x16xf32>
    %21 = arith.mulf %18, %20 : vector<128x16xf32>
    %22 = arith.truncf %21 : vector<128x16xf32> to vector<128x16xbf16>
    %c0_8 = arith.constant 0 : index
    %c0_9 = arith.constant 0 : index
    %23 = vector.load %arg5[%c0_8, %c0_9] : memref<32x16xbf16, #tpu.memory_space<vmem>>, vector<32x16xbf16>
    %cst_10 = arith.constant dense<0.000000e+00> : vector<32x128xf32>
    %24 = tpu.matmul %23, %22, %cst_10 {dimension_numbers = #tpu.dot_dimension_numbers<[1], [1], [0], [0], [0, 0, 1, 0], [], []>} : vector<32x16xbf16>, vector<128x16xbf16>, vector<32x128xf32> -> vector<32x128xf32>
    %c0_11 = arith.constant 0 : index
    %c0_12 = arith.constant 0 : index
    %c0_13 = arith.constant 0 : index
    %25 = vector.load %arg3[%c0_11, %c0_12, %c0_13] : memref<1x32x128xf32, #tpu.memory_space<vmem>>, vector<1x32x128xf32>
    %26 = vector.shape_cast %25 : vector<1x32x128xf32> to vector<32x128xf32>
    %27 = arith.addf %24, %26 : vector<32x128xf32>
    %c0_14 = arith.constant 0 : index
    %c0_15 = arith.constant 0 : index
    %c0_16 = arith.constant 0 : index
    %28 = vector.load %arg6[%c0_14, %c0_15, %c0_16] : memref<1x32x128xf32, #tpu.memory_space<vmem>>, vector<1x32x128xf32>
    %29 = vector.shape_cast %28 : vector<1x32x128xf32> to vector<32x128xf32>
    %30 = vector.shape_cast %27 : vector<32x128xf32> to vector<1x32x128xf32>
    tpu.vector_store %arg6[%c0_14, %c0_15, %c0_16], %30 {strides = array<i32>} : memref<1x32x128xf32, #tpu.memory_space<vmem>>, vector<1x32x128xf32>,
    return
  }
  func.func @transform_0(%arg0: i32, %arg1: i32) -> (i32, i32, i32) {
    %c0_i32 = arith.constant 0 : i32
    %c0_i32_0 = arith.constant 0 : i32
    %c0_i32_1 = arith.constant 0 : i32
    return %arg0, %c0_i32, %c0_i32_0 : i32, i32, i32
  }
  func.func @transform_1(%arg0: i32, %arg1: i32) -> (i32, i32, i32) {
    %c0_i32 = arith.constant 0 : i32
    %c0_i32_0 = arith.constant 0 : i32
    return %arg0, %c0_i32, %arg1 : i32, i32, i32
  }
  func.func @transform_2(%arg0: i32, %arg1: i32) -> (i32, i32) {
    %c0_i32 = arith.constant 0 : i32
    %c0_i32_0 = arith.constant 0 : i32
    %c0_i32_1 = arith.constant 0 : i32
    return %c0_i32, %c0_i32_0 : i32, i32
  }
  func.func @transform_3(%arg0: i32, %arg1: i32) -> (i32, i32) {
    %c0_i32 = arith.constant 0 : i32
    %c0_i32_0 = arith.constant 0 : i32
    %c0_i32_1 = arith.constant 0 : i32
    return %c0_i32, %c0_i32_0 : i32, i32
  }
  func.func @transform_4(%arg0: i32, %arg1: i32) -> (i32, i32, i32) {
    %c0_i32 = arith.constant 0 : i32
    %c0_i32_0 = arith.constant 0 : i32
    return %arg0, %c0_i32, %arg1 : i32, i32, i32
  }
}

</mosaic_0001>

<bundles_post_ra>
// kernel: sagan_attention_pallas.1
= control target key start
LH: loop header
LB: loop body
LE: loop exit
PB: predicated region body
PF: predicated region fallthrough
CT: control target
= control target key end

     0   :  { %s1557_s15 = smov 0   ;;  %s1559_s16 = smov 0   ;;  %s1845_s0 = inlined_call_operand.vmem [shape: bf16[2,32,256], index: 0, kind: input, shape index: {}]   ;;  %s1846_s1 = inlined_call_operand.vmem [shape: f32[2,32,256], index: 1, kind: input, shape index: {}]   ;;  %s1847_s2 = inlined_call_operand.vmem [shape: bf16[48,32], index: 2, kind: input, shape index: {}]   ;;  %s1848_s3 = inlined_call_operand.vmem [shape: bf16[32,16], index: 3, kind: input, shape index: {}]   ;;  %s1849_s4 = inlined_call_operand.vmem [shape: f32[2,32,256], index: 4, kind: output, shape index: {}]  }
   0x1   :  { %s1561_s17 = smov 0   ;;  %s1563_s18 = smov 0  }
   0x2   :  { %s1565_s19 = smov 0   ;;  %s1567_s20 = smov 0  }
   0x3   :  { %s1569_s21 = smov 0  }
   0x4 LB: > { %s23_s22 = sadd.s32 1, %s1520_s19  ;;  %s26_s23 = sadd.s32 1, %s1524_s20  ;;  %s1528_s21 = sphi %s1569_s21, %s14_s21   ;;  %s1524_s20 = sphi %s1567_s20, %s1856_s20   ;;  %s1520_s19 = sphi %s1565_s19, %s1855_s19   ;;  %s1516_s18 = sphi %s1563_s18, %s1854_s18   ;;  %s1512_s17 = sphi %s1561_s17, %s1853_s17   ;;  %s1508_s16 = sphi %s1559_s16, %s1852_s16   ;;  %s1504_s15 = sphi %s1557_s15, %s1851_s15  }
   0x5   : > { %p24_p0 = scmp.ge.s32.totalorder %s23_s22, 2  ;;  %s1228_s24 = sadd.s32 4294967295, %s1528_s21  }
   0x6   : > { %p68_p1 = scmp.ne.s32.totalorder %s1508_s16, %s1504_s15  ;;  %p69_p2 = scmp.eq.s32.totalorder %s1528_s21, 0 }
   0x7   : > { %s1858_s22 = smov (%p24_p0, %s23_s22), 0  ;;  %s1860_s23 = smov (!%p24_p0, %s26_s23), %s1524_s20 }
   0x8   : > { %p28_p3 = scmp.ge.s32.totalorder %s1860_s23, 2  ;;  %p142_p4 = scmp.eq.s32.totalorder %s1228_s24, 3 }
   0x9   : > { %s57_s25 = ssub.s32 %s1520_s19, %s1858_s22  ;;  %p70_p5 = por %p69_p2, %p68_p1 }
   0xa   : > { %s1862_s23 = smov (%p28_p3, %s1860_s23), 0  ;;  %p1605_p6 = por %p142_p4, %p68_p1 }
   0xb   : > { %s56_s27 = ssub.s32 %s1524_s20, %s1862_s23  ;;  %s61_s29 = sadd.s32 1, %s1508_s16 }
   0xc   : > { %s58_s28 = sor.u32 %s57_s25, %s56_s27  ;;  %p1231_p8 = scmp.ge.s32.totalorder %s1528_s21, 4 }
   0xd   : > { %p59_p7 = scmp.eq.s32.totalorder %s58_s28, 0 }
   0xe   : > { %170 = sbr.rel (%p1231_p8) target bundleno = 29 (0x1d), region = 24 }
   0xf   : > { %s1613_s30 = scalar_select %p59_p7, %s1508_s16, %s61_s29  }
  0x15   : > { %181 = sbr.rel (!%p70_p5) target bundleno = 29 (0x1d), region = 32  ;;  %s183_s5 = sand.u32 (%p70_p5), 1, %s1508_s16  }
  0x16   : > { %s1233_s6 = sshll.u32 (%p70_p5), %s1524_s20, 3  ;;  %s1232_s7 = sshll.u32 (%p70_p5), %s183_s5, 5 }
  0x17   : > { %s187_s8 = sadd.s32 (%p70_p5), %s1520_s19, %s1233_s6  ;;  %s185_s13 = scalar_lea.vmem (%p70_p5), [#allocation5], %s1232_s7 }
  0x18   : > { %s1234_s9 = sshll.u32 (%p70_p5), %s187_s8, 3 }
  0x19   : > { %s189_s12 = scalar_lea.vmem (%p70_p5), %s1846_s1, %s1234_s9 }
  0x1a   : > { %v223_v0 = vld [vmem:[%s189_s12] sm:$0xff] (%p70_p5)  ;;  %v225_v1 = vld [vmem:[%s189_s12 + $0x10] sm:$0xff] (%p70_p5) }
  0x1b   : > { %v227_v2 = vld [vmem:[%s189_s12 + $0x20] sm:$0xff] (%p70_p5)  ;;  %224 = vst [vmem:[%s185_s13] sm:$0xff] (%p70_p5), %v223_v0  ;;  %226 = vst [vmem:[%s185_s13 + $0x8] sm:$0xff] (%p70_p5), %v225_v1  ;;  %v229_v3 = vld [vmem:[%s189_s12 + $0x30] sm:$0xff] (%p70_p5) }
  0x1c   : > { %228 = vst [vmem:[%s185_s13 + $0x10] sm:$0xff] %v227_v2  ;;  %230 = vst [vmem:[%s185_s13 + $0x18] sm:$0xff] %v229_v3 }
  0x1d PF: > { %p1235_p9 = scmp.ge.s32.totalorder %s1528_s21, 1  ;;  %p235_p10 = scmp.lt.s32.totalorder %s1528_s21, 5 }
  0x1f   : > { %p236_p11 = pnand %p1235_p9, %p235_p10 }
  0x20   : > { %s242_s14 = sand.u32 (!%p236_p11), 1, %s1504_s15   ;;  %p271_p12 = scmp.lt.s32.totalorder (!%p236_p11), %s1516_s18, 1 }
  0x21   : > { %239 = sbr.rel (%p236_p11) target bundleno = 1276 (0x4fc), region = 70  ;;  %s1236_s24 = sshll.u32 (!%p236_p11), %s242_s14, 5 }
  0x22   : > { %s1630_s6 = scalar_lea.vmem (!%p236_p11), [#allocation5], %s1236_s24  ;;  %s1632_s7 = scalar_lea.vmem (!%p236_p11), [#allocation6], %s1236_s24 }
  0x23   : > { %p1240_p13 = scmp.ne.s32.totalorder (!%p236_p11), %s1512_s17, 0 }
  0x28   : > { %s272_s25 = scalar_select %p271_p12, %s1516_s18, 1 }
  0x29   : > { %280 = sbr.rel (%p1240_p13) target bundleno = 279 (0x117), region = 78  ;;  %v1530_v6 = vmov (!%p1240_p13), 0   ;;  %v1373_v9 = vld [vmem:[%s1847_s2] sm:$0xff] (!%p1240_p13)   ;;  %v1374_v10 = vld [vmem:[%s1847_s2 + $0x8] sm:$0xff] (!%p1240_p13)   ;;  %vm312_vm0 = vcmask (!%p1240_p13), 261120   ;;  %v1375_v11 = vld [vmem:[%s1847_s2 + $0x10] sm:$0xff] (!%p1240_p13)  }
  0x2a   : > { %s1270_s27 = sshll.u32 %s272_s25, 5  ;;  %348 = vmatprep.mubr.bf16.mxu0 (!%p1240_p13), %v1530_v6  ;;  %405 = vmatprep.mubr.bf16.mxu1 (!%p1240_p13), %v1530_v6 }
  0x2b   : > { %s275_s5 = scalar_lea.vmem %s1845_s0, %s1270_s27 }
  0x2c   : > { %v1367_v4 = vld [vmem:[%s275_s5 + $0x4] ss:$8 sps:$4 sm:$0xff] (!%p1240_p13)   ;;  %v1369_v5 = vld [vmem:[%s275_s5] ss:$8 sps:$4 sm:$0xff] (!%p1240_p13)   ;;  %v1370_v7 = vld [vmem:[%s275_s5 + $0x14] ss:$8 sps:$4 sm:$0xff] (!%p1240_p13)  }
  0x2d   : > { %316 = vmatprep.subr.bf16.mxu0 (!%p1240_p13), %v1367_v4  ;;  %373 = vmatprep.subr.bf16.mxu1 (!%p1240_p13), %v1367_v4  ;;  %v1372_v8 = vld [vmem:[%s275_s5 + $0x10] ss:$8 sps:$4 sm:$0xff] (!%p1240_p13)  }
  0x2e   : > { %317 = vmatpush1.bf16.msra.mxu0 (!%p1240_p13), %v1369_v5  ;;  %374 = vmatpush1.bf16.msra.mxu1 (!%p1240_p13), %v1369_v5 }
  0x2f   : > { %318 = vmatprep.subr.bf16.mxu0 (!%p1240_p13), %v1370_v7  ;;  %375 = vmatprep.subr.bf16.mxu1 (!%p1240_p13), %v1370_v7 }
  0x32   : > { %319 = vmatpush1.bf16.msra.mxu0 %v1372_v8  ;;  %376 = vmatpush1.bf16.msra.mxu1 %v1372_v8 }
  0x33   : > { %430 = vmatprep.subr.bf16.mxu0 %v1367_v4 }
  0x35   : > { %1246 = vmatmul.mubr.msk.bf16.vlgmr.msra.gmra.mrb[0].mxu0 %vm312_vm0, %v1373_v9  ;;  %1248 = vmatmul.mubr.msk.bf16.vlgmr.msra.gmra.mrb[0].mxu1 %vm312_vm0, %v1374_v10 }
  0x36   : > { %431 = vmatpush1.bf16.msra.mxu0 %v1369_v5  ;;  %462 = vmatprep.mubr.bf16.mxu0 %v1530_v6 }
  0x37   : > { %432 = vmatprep.subr.bf16.mxu0 %v1370_v7 }
  0x3a   : > { %433 = vmatpush1.bf16.msra.mxu0 %v1372_v8 }
  0x3d   : > { %1250 = vmatmul.mubr.msk.bf16.vlgmr.msra.gmra.mrb[4].mxu0 %vm312_vm0, %v1375_v11 }
 0x108   : > { %v350_v12 = vpop.f32.mrb[0].mxu0  ;;  %v407_v13 = vpop.f32.mrb[0].mxu1 }
 0x109   : > { %v352_v14 = vpop.f32.mrb[1].mxu0  ;;  %v409_v15 = vpop.f32.mrb[1].mxu1 }
 0x10a   : > { %v354_v16 = vpop.f32.mrb[2].mxu0  ;;  %v411_v17 = vpop.f32.mrb[2].mxu1 }
 0x10b   : > { %v359_v18 = vpack.c.bf16 %v354_v16, %v350_v12  ;;  %v356_v19 = vpop.f32.mrb[3].mxu0  ;;  %v416_v20 = vpack.c.bf16 %v411_v17, %v407_v13  ;;  %v413_v21 = vpop.f32.mrb[3].mxu1 }
 0x10c   : > { %v360_v22 = vpack.c.bf16 %v356_v19, %v352_v14  ;;  %v417_v23 = vpack.c.bf16 %v413_v21, %v409_v15 }
 0x10d   : > { %361 = vst [vmem:[#allocation2] sm:$0xff] %v359_v18  ;;  %418 = vst [vmem:[#allocation3] sm:$0xff] %v416_v20 }
 0x10e   : > { %362 = vst [vmem:[#allocation2 + $0x8] sm:$0xff] %v360_v22  ;;  %419 = vst [vmem:[#allocation3 + $0x8] sm:$0xff] %v417_v23 }
 0x110   : > { %v464_v24 = vpop.f32.mrb[4].mxu0 }
 0x111   : > { %v466_v25 = vpop.f32.mrb[5].mxu0 }
 0x112   : > { %v468_v26 = vpop.f32.mrb[6].mxu0 }
 0x113   : > { %v473_v27 = vpack.c.bf16 %v468_v26, %v464_v24  ;;  %v470_v28 = vpop.f32.mrb[7].mxu0 }
 0x114   : > { %v474_v29 = vpack.c.bf16 %v470_v28, %v466_v25 }
 0x115   : > { %475 = vst [vmem:[#allocation4] sm:$0xff] %v473_v27 }
 0x116   : > { %476 = vst [vmem:[#allocation4 + $0x8] sm:$0xff] %v474_v29 }
 0x117 PF: > { %s1251_s13 = sshll.u32 %s1512_s17, 7  ;;  %v484_v30 = vld [vmem:[#allocation2 + $0x8] sm:$0xff]  ;;  %v483_v31 = vld [vmem:[#allocation2] sm:$0xff]  ;;  %v1531_v32 = vmov 0   ;;  %vm501_vm1 = vcmask 130048   ;;  %s1266_s15 = sshll.u32 (%p1605_p6), %s1516_s18, 3 }
 0x118   : > { %s478_s14 = sshra.s32 %s1251_s13, 7  ;;  %526 = vmatprep.subr.bf16.mxu0 %v484_v30  ;;  %558 = vmatprep.mubr.bf16.mxu0 %v1531_v32 }
 0x119   : > { %s1252_s24 = sshll.u32 %s478_s14, 3  ;;  %527 = vmatpush1.bf16.msra.mxu0 %v483_v31 }
 0x11a   : > { %s481_s25 = scalar_lea.vmem [#allocation3], %s1252_s24 }
 0x11b   : > { %v482_v33 = vld [vmem:[%s481_s25] sm:$0xff] }
 0x11c   : > { %485 = vxpose.xlu0.c.b16.start.end [1/1] (short) %v482_v33, 128  ;;  %v847_v3 = vld [vmem:[#allocation4] sm:$0xff] }
 0x11d   : > { %v848_v2 = vld [vmem:[#allocation4 + $0x8] sm:$0xff] }
 0x11e   : > { %849 = vmatprep.subr.bf16.mxu1 %v848_v2 }
 0x11f   : > { %850 = vmatpush1.bf16.xpose.msra.mxu1 %v847_v3 }
 0x182   : > { %v493_v34 = vpop.trf.xlu0 }
 0x183   : > { %1253 = vmatmul.mubr.msk.bf16.vlgmr.msra.gmra.mrb[0].mxu0 %vm501_vm1, %v493_v34 }
 0x184   : > { %568 = vmatprep.mubr.bf16.mxu0 %v1531_v32 }
 0x186   : > { %v494_v35 = vpop.trf.xlu0 }
 0x18a   : > { %v495_v36 = vpop.trf.xlu0 }
 0x18b   : > { %1254 = vmatmul.mubr.msk.bf16.gmra.mrb[4].mxu0 %vm501_vm1, %v494_v35 }
 0x18c   : > { %578 = vmatprep.mubr.bf16.mxu0 %v1531_v32 }
 0x18e   : > { %v496_v37 = vpop.trf.xlu0 }
 0x192   : > { %v497_v38 = vpop.trf.xlu0 }
 0x193   : > { %1255 = vmatmul.mubr.msk.bf16.gmra.mrb[8].mxu0 %vm501_vm1, %v495_v36 }
 0x194   : > { %588 = vmatprep.mubr.bf16.mxu0 %v1531_v32 }
 0x196   : > { %v498_v39 = vpop.trf.xlu0 }
 0x19a   : > { %v499_v40 = vpop.trf.xlu0 }
 0x19b   : > { %1256 = vmatmul.mubr.msk.bf16.gmra.mrb[12].mxu0 %vm501_vm1, %v496_v37 }
 0x19c   : > { %598 = vmatprep.mubr.bf16.mxu0 %v1531_v32 }
 0x19e   : > { %v500_v41 = vpop.trf.xlu0 }
 0x1a3   : > { %1257 = vmatmul.mubr.msk.bf16.gmra.mrb[16].mxu0 %vm501_vm1, %v497_v38 }
 0x1a4   : > { %608 = vmatprep.mubr.bf16.mxu0 %v1531_v32 }
 0x1ab   : > { %1258 = vmatmul.mubr.msk.bf16.gmra.mrb[20].mxu0 %vm501_vm1, %v498_v39 }
 0x1ac   : > { %618 = vmatprep.mubr.bf16.mxu0 %v1531_v32 }
 0x1b3   : > { %1259 = vmatmul.mubr.msk.bf16.gmra.mrb[24].mxu0 %vm501_vm1, %v499_v40 }
 0x1b4   : > { %628 = vmatprep.mubr.bf16.mxu0 %v1531_v32 }
 0x1bb   : > { %1260 = vmatmul.mubr.msk.bf16.gmra.mrb[28].mxu0 %vm501_vm1, %v500_v41 }
 0x256   : > { %v1653_v42 = vpop.f32.mrb[0].mxu0 }
 0x257   : > { %v1655_v43 = vpop.f32.mrb[1].mxu0 }
 0x258   : > { %v1657_v44 = vpop.f32.mrb[2].mxu0  ;;  %v639_v45 = vmax.f32 %v1653_v42, %v1655_v43 }
 0x259   : > { %v1661_v46 = vpop.f32.mrb[3].mxu0 }
 0x25a   : > { %640 = vmax.xlane.f32.xlu0 %v639_v45  ;;  %v642_v47 = vmax.f32 %v1657_v44, %v1661_v46 }
 0x25c   : > { %643 = vmax.xlane.f32.xlu1 %v642_v47 }
 0x25e   : > { %v1665_v48 = vpop.f32.mrb[4].mxu0 }
 0x25f   : > { %v1667_v49 = vpop.f32.mrb[5].mxu0 }
 0x260   : > { %v1669_v50 = vpop.f32.mrb[6].mxu0  ;;  %v645_v51 = vmax.f32 %v1665_v48, %v1667_v49 }
 0x261   : > { %v1673_v52 = vpop.f32.mrb[7].mxu0 }
 0x262   : > { %646 = vmax.xlane.f32.xlu1 %v645_v51  ;;  %v648_v53 = vmax.f32 %v1669_v50, %v1673_v52 }
 0x266   : > { %649 = vmax.xlane.f32.xlu1 %v648_v53  ;;  %v1677_v54 = vpop.f32.mrb[8].mxu0 }
 0x267   : > { %v1679_v55 = vpop.f32.mrb[9].mxu0 }
 0x268   : > { %v1681_v56 = vpop.f32.mrb[10].mxu0  ;;  %v651_v57 = vmax.f32 %v1677_v54, %v1679_v55 }
 0x269   : > { %v1685_v58 = vpop.f32.mrb[11].mxu0 }
 0x26a   : > { %652 = vmax.xlane.f32.xlu1 %v651_v57  ;;  %v654_v59 = vmax.f32 %v1681_v56, %v1685_v58 }
 0x26e   : > { %655 = vmax.xlane.f32.xlu1 %v654_v59  ;;  %v1689_v60 = vpop.f32.mrb[12].mxu0 }
 0x26f   : > { %v1691_v61 = vpop.f32.mrb[13].mxu0 }
 0x270   : > { %v1693_v62 = vpop.f32.mrb[14].mxu0  ;;  %v657_v63 = vmax.f32 %v1689_v60, %v1691_v61 }
 0x271   : > { %v1697_v0 = vpop.f32.mrb[15].mxu0 }
 0x272   : > { %658 = vmax.xlane.f32.xlu1 %v657_v63  ;;  %v660_v1 = vmax.f32 %v1693_v62, %v1697_v0 }
 0x276   : > { %661 = vmax.xlane.f32.xlu1 %v660_v1  ;;  %v1701_v4 = vpop.f32.mrb[16].mxu0 }
 0x277   : > { %v1703_v5 = vpop.f32.mrb[17].mxu0 }
 0x278   : > { %v1705_v6 = vpop.f32.mrb[18].mxu0  ;;  %v663_v7 = vmax.f32 %v1701_v4, %v1703_v5 }
 0x279   : > { %v1709_v8 = vpop.f32.mrb[19].mxu0 }
 0x27a   : > { %664 = vmax.xlane.f32.xlu1 %v663_v7  ;;  %v666_v9 = vmax.f32 %v1705_v6, %v1709_v8 }
 0x27e   : > { %667 = vmax.xlane.f32.xlu1 %v666_v9  ;;  %v1713_v10 = vpop.f32.mrb[20].mxu0 }
 0x27f   : > { %v1715_v11 = vpop.f32.mrb[21].mxu0 }
 0x280   : > { %v1717_v12 = vpop.f32.mrb[22].mxu0  ;;  %v669_v13 = vmax.f32 %v1713_v10, %v1715_v11 }
 0x281   : > { %v1721_v14 = vpop.f32.mrb[23].mxu0 }
 0x282   : > { %670 = vmax.xlane.f32.xlu1 %v669_v13  ;;  %v672_v15 = vmax.f32 %v1717_v12, %v1721_v14 }
 0x286   : > { %673 = vmax.xlane.f32.xlu1 %v672_v15  ;;  %v1725_v16 = vpop.f32.mrb[24].mxu0 }
 0x287   : > { %v1727_v17 = vpop.f32.mrb[25].mxu0 }
 0x288   : > { %v1729_v18 = vpop.f32.mrb[26].mxu0  ;;  %v675_v19 = vmax.f32 %v1725_v16, %v1727_v17 }
 0x289   : > { %v1733_v20 = vpop.f32.mrb[27].mxu0 }
 0x28a   : > { %676 = vmax.xlane.f32.xlu1 %v675_v19  ;;  %v678_v21 = vmax.f32 %v1729_v18, %v1733_v20 }
 0x28c   : > { %679 = vmax.xlane.f32.xlu0 %v678_v21 }
 0x28e   : > { %v1737_v22 = vpop.f32.mrb[28].mxu0 }
 0x28f   : > { %v1739_v23 = vpop.f32.mrb[29].mxu0 }
 0x290   : > { %v1741_v24 = vpop.f32.mrb[30].mxu0  ;;  %v681_v25 = vmax.f32 %v1737_v22, %v1739_v23 }
 0x291   : > { %v1745_v26 = vpop.f32.mrb[31].mxu0 }
 0x292   : > { %682 = vmax.xlane.f32.xlu1 %v681_v25  ;;  %v684_v27 = vmax.f32 %v1741_v24, %v1745_v26 }
 0x294   : > { %685 = vmax.xlane.f32.xlu0 %v684_v27 }
 0x2e7   : > { %v641_v28 = vpop.xlane.xlu0 %640 }
 0x2e8   : > { %v687_v29 = vsub.f32 %v1653_v42, %v641_v28  ;;  %v688_v30 = vsub.f32 %v1655_v43, %v641_v28 }
 0x2e9   : > { %v644_v31 = vpop.xlane.xlu1 %643 }
 0x2ea   : > { %v719_v32 = vmul.f32 1.442695, %v687_v29  ;;  %v721_v33 = vmul.f32 1.442695, %v688_v30  ;;  %v689_v34 = vsub.f32 %v1657_v44, %v644_v31  ;;  %v690_v35 = vsub.f32 %v1661_v46, %v644_v31 }
 0x2ec   : > { %1378 = vpow2.f32 %v719_v32  ;;  %v723_v36 = vmul.f32 1.442695, %v689_v34  ;;  %v725_v37 = vmul.f32 1.442695, %v690_v35 }
 0x2ed   : > { %1380 = vpow2.f32 %v721_v33 }
 0x2ee   : > { %1382 = vpow2.f32 %v723_v36 }
 0x2ef   : > { %1384 = vpow2.f32 %v725_v37  ;;  %v647_v38 = vpop.xlane.xlu1 %646 }
 0x2f0   : > { %v691_v39 = vsub.f32 %v1665_v48, %v647_v38  ;;  %v692_v40 = vsub.f32 %v1667_v49, %v647_v38 }
 0x2f2   : > { %v727_v41 = vmul.f32 1.442695, %v691_v39  ;;  %v729_v42 = vmul.f32 1.442695, %v692_v40 }
 0x2f3   : > { %v650_v43 = vpop.xlane.xlu1 %649 }
 0x2f4   : > { %1386 = vpow2.f32 %v727_v41  ;;  %v693_v45 = vsub.f32 %v1669_v50, %v650_v43  ;;  %v694_v44 = vsub.f32 %v1673_v52, %v650_v43 }
 0x2f5   : > { %1388 = vpow2.f32 %v729_v42 }
 0x2f6   : > { %v1379_v46 = vpop.eup %1378  ;;  %v731_v47 = vmul.f32 1.442695, %v693_v45  ;;  %v733_v51 = vmul.f32 1.442695, %v694_v44 }
 0x2f7   : > { %v1381_v53 = vpop.eup %1380  ;;  %v653_v57 = vpop.xlane.xlu1 %652 }
 0x2f8   : > { %v1383_v59 = vpop.eup %1382  ;;  %1390 = vpow2.f32 %v731_v47  ;;  %v695_v48 = vsub.f32 %v1677_v54, %v653_v57  ;;  %v696_v49 = vsub.f32 %v1679_v55, %v653_v57  ;;  %v783_v63 = vadd.f32 %v1381_v53, %v1379_v46 }
 0x2f9   : > { %v1385_v1 = vpop.eup %1384  ;;  %1392 = vpow2.f32 %v733_v51  ;;  %v831_v2 = vpack.c.bf16 %v1383_v59, %v1379_v46 }
 0x2fa   : > { %v735_v3 = vmul.f32 1.442695, %v695_v48  ;;  %v737_v50 = vmul.f32 1.442695, %v696_v49  ;;  %784 = vadd.xlane.f32.xlu1 %v783_v63  ;;  %v786_v52 = vadd.f32 %v1385_v1, %v1383_v59  ;;  %v832_v7 = vpack.c.bf16 %v1385_v1, %v1381_v53 }
 0x2fb   : > { %v656_v9 = vpop.xlane.xlu1 %655 }
 0x2fc   : > { %1394 = vpow2.f32 %v735_v3  ;;  %v697_v13 = vsub.f32 %v1681_v56, %v656_v9  ;;  %v698_v15 = vsub.f32 %v1685_v58, %v656_v9  ;;  %787 = vadd.xlane.f32.xlu0 %v786_v52  ;;  %881 = vmatprep.mubr.bf16.mxu1 %v832_v7 }
 0x2fd   : > { %1396 = vpow2.f32 %v737_v50  ;;  %882 = vmatmul.mubr.bf16.vlgmr.msra.gmra.mrb[0].mxu1 %v831_v2 }
 0x2fe   : > { %v1387_v54 = vpop.eup %1386  ;;  %v739_v55 = vmul.f32 1.442695, %v697_v13  ;;  %v741_v19 = vmul.f32 1.442695, %v698_v15 }
 0x2ff   : > { %v1389_v21 = vpop.eup %1388  ;;  %v659_v25 = vpop.xlane.xlu1 %658 }
 0x300   : > { %1398 = vpow2.f32 %v739_v55  ;;  %v699_v27 = vsub.f32 %v1689_v60, %v659_v25  ;;  %v700_v28 = vsub.f32 %v1691_v61, %v659_v25  ;;  %v789_v29 = vadd.f32 %v1389_v21, %v1387_v54 }
 0x301   : > { %1400 = vpow2.f32 %v741_v19 }
 0x302   : > { %v1391_v30 = vpop.eup %1390  ;;  %v743_v56 = vmul.f32 1.442695, %v699_v27  ;;  %v745_v31 = vmul.f32 1.442695, %v700_v28  ;;  %790 = vadd.xlane.f32.xlu1 %v789_v29 }
 0x303   : > { %v1393_v58 = vpop.eup %1392  ;;  %v662_v32 = vpop.xlane.xlu1 %661  ;;  %v833_v33 = vpack.c.bf16 %v1391_v30, %v1387_v54 }
 0x304   : > { %1402 = vpow2.f32 %v743_v56  ;;  %v701_v34 = vsub.f32 %v1693_v62, %v662_v32  ;;  %v702_v35 = vsub.f32 %v1697_v0, %v662_v32  ;;  %v792_v36 = vadd.f32 %v1393_v58, %v1391_v30 }
 0x305   : > { %1404 = vpow2.f32 %v745_v31  ;;  %v834_v37 = vpack.c.bf16 %v1393_v58, %v1389_v21 }
 0x306   : > { %v1395_v60 = vpop.eup %1394  ;;  %v747_v38 = vmul.f32 1.442695, %v701_v34  ;;  %v749_v61 = vmul.f32 1.442695, %v702_v35  ;;  %793 = vadd.xlane.f32.xlu0 %v792_v36 }
 0x307   : > { %v1397_v39 = vpop.eup %1396  ;;  %889 = vmatprep.mubr.bf16.mxu1 %v834_v37  ;;  %v665_v40 = vpop.xlane.xlu1 %664 }
 0x308   : > { %1406 = vpow2.f32 %v747_v38  ;;  %890 = vmatmul.mubr.bf16.gmra.mrb[4].mxu1 %v833_v33  ;;  %v703_v41 = vsub.f32 %v1701_v4, %v665_v40  ;;  %v704_v42 = vsub.f32 %v1703_v5, %v665_v40  ;;  %v795_v43 = vadd.f32 %v1397_v39, %v1395_v60 }
 0x309   : > { %1408 = vpow2.f32 %v749_v61 }
 0x30a   : > { %v1399_v62 = vpop.eup %1398  ;;  %v751_v0 = vmul.f32 1.442695, %v703_v41  ;;  %v753_v45 = vmul.f32 1.442695, %v704_v42  ;;  %796 = vadd.xlane.f32.xlu1 %v795_v43 }
 0x30b   : > { %v1401_v44 = vpop.eup %1400  ;;  %v668_v46 = vpop.xlane.xlu1 %667  ;;  %v835_v47 = vpack.c.bf16 %v1399_v62, %v1395_v60 }
 0x30c   : > { %1410 = vpow2.f32 %v751_v0  ;;  %v705_v51 = vsub.f32 %v1705_v6, %v668_v46  ;;  %v706_v53 = vsub.f32 %v1709_v8, %v668_v46  ;;  %v798_v57 = vadd.f32 %v1401_v44, %v1399_v62 }
 0x30d   : > { %1412 = vpow2.f32 %v753_v45  ;;  %v836_v59 = vpack.c.bf16 %v1401_v44, %v1397_v39 }
 0x30e   : > { %v1403_v4 = vpop.eup %1402  ;;  %v755_v48 = vmul.f32 1.442695, %v705_v51  ;;  %v757_v5 = vmul.f32 1.442695, %v706_v53  ;;  %799 = vadd.xlane.f32.xlu0 %v798_v57 }
 0x30f   : > { %v1405_v49 = vpop.eup %1404  ;;  %897 = vmatprep.mubr.bf16.mxu1 %v836_v59  ;;  %v671_v63 = vpop.xlane.xlu1 %670 }
 0x310   : > { %1414 = vpow2.f32 %v755_v48  ;;  %898 = vmatmul.mubr.bf16.gmra.mrb[8].mxu1 %v835_v47  ;;  %v707_v1 = vsub.f32 %v1713_v10, %v671_v63  ;;  %v708_v2 = vsub.f32 %v1715_v11, %v671_v63  ;;  %v801_v3 = vadd.f32 %v1405_v49, %v1403_v4 }
 0x311   : > { %1416 = vpow2.f32 %v757_v5 }
 0x312   : > { %v1407_v6 = vpop.eup %1406  ;;  %v759_v8 = vmul.f32 1.442695, %v707_v1  ;;  %v761_v50 = vmul.f32 1.442695, %v708_v2  ;;  %802 = vadd.xlane.f32.xlu1 %v801_v3 }
 0x313   : > { %v1409_v52 = vpop.eup %1408  ;;  %v674_v7 = vpop.xlane.xlu1 %673  ;;  %v837_v9 = vpack.c.bf16 %v1407_v6, %v1403_v4 }
 0x314   : > { %1418 = vpow2.f32 %v759_v8  ;;  %v709_v13 = vsub.f32 %v1717_v12, %v674_v7  ;;  %v710_v15 = vsub.f32 %v1721_v14, %v674_v7  ;;  %v804_v54 = vadd.f32 %v1409_v52, %v1407_v6  ;;  %v1376_v6 = vld [vmem:[%s1848_s3] sm:$0xff]  }
 0x315   : > { %1420 = vpow2.f32 %v761_v50  ;;  %v838_v55 = vpack.c.bf16 %v1409_v52, %v1405_v49  ;;  %1297 = vmatprep.mubr.msk.bf16.mxu0 %vm501_vm1, %v1376_v6 }
 0x316   : > { %v1411_v10 = vpop.eup %1410  ;;  %v763_v19 = vmul.f32 1.442695, %v709_v13  ;;  %v765_v11 = vmul.f32 1.442695, %v710_v15  ;;  %805 = vadd.xlane.f32.xlu0 %v804_v54 }
 0x317   : > { %v1413_v21 = vpop.eup %1412  ;;  %905 = vmatprep.mubr.bf16.mxu1 %v838_v55  ;;  %v677_v25 = vpop.xlane.xlu1 %676 }
 0x318   : > { %1422 = vpow2.f32 %v763_v19  ;;  %906 = vmatmul.mubr.bf16.gmra.mrb[12].mxu1 %v837_v9  ;;  %v711_v27 = vsub.f32 %v1725_v16, %v677_v25  ;;  %v712_v28 = vsub.f32 %v1727_v17, %v677_v25  ;;  %v807_v29 = vadd.f32 %v1413_v21, %v1411_v10 }
 0x319   : > { %1424 = vpow2.f32 %v765_v11  ;;  %v680_v12 = vpop.xlane.xlu0 %679 }
 0x31a   : > { %v1415_v14 = vpop.eup %1414  ;;  %v767_v30 = vmul.f32 1.442695, %v711_v27  ;;  %v769_v56 = vmul.f32 1.442695, %v712_v28  ;;  %808 = vadd.xlane.f32.xlu1 %v807_v29  ;;  %v713_v31 = vsub.f32 %v1729_v18, %v680_v12  ;;  %v714_v58 = vsub.f32 %v1733_v20, %v680_v12 }
 0x31b   : > { %v1417_v32 = vpop.eup %1416  ;;  %v839_v33 = vpack.c.bf16 %v1415_v14, %v1411_v10 }
 0x31c   : > { %1426 = vpow2.f32 %v767_v30  ;;  %v771_v34 = vmul.f32 1.442695, %v713_v31  ;;  %v773_v35 = vmul.f32 1.442695, %v714_v58  ;;  %v810_v36 = vadd.f32 %v1417_v32, %v1415_v14 }
 0x31d   : > { %1428 = vpow2.f32 %v769_v56  ;;  %v840_v16 = vpack.c.bf16 %v1417_v32, %v1413_v21 }
 0x31e   : > { %v1419_v17 = vpop.eup %1418  ;;  %1430 = vpow2.f32 %v771_v34  ;;  %811 = vadd.xlane.f32.xlu0 %v810_v36 }
 0x31f   : > { %v1421_v37 = vpop.eup %1420  ;;  %1432 = vpow2.f32 %v773_v35  ;;  %913 = vmatprep.mubr.bf16.mxu1 %v840_v16  ;;  %v683_v60 = vpop.xlane.xlu1 %682 }
 0x320   : > { %914 = vmatmul.mubr.bf16.gmra.mrb[16].mxu1 %v839_v33  ;;  %v715_v18 = vsub.f32 %v1737_v22, %v683_v60  ;;  %v716_v20 = vsub.f32 %v1739_v23, %v683_v60  ;;  %v813_v38 = vadd.f32 %v1421_v37, %v1419_v17 }
 0x321   : > { %v686_v61 = vpop.xlane.xlu0 %685 }
 0x322   : > { %v1423_v39 = vpop.eup %1422  ;;  %v775_v40 = vmul.f32 1.442695, %v715_v18  ;;  %v777_v41 = vmul.f32 1.442695, %v716_v20  ;;  %814 = vadd.xlane.f32.xlu1 %v813_v38  ;;  %v717_v42 = vsub.f32 %v1741_v24, %v686_v61  ;;  %v718_v43 = vsub.f32 %v1745_v26, %v686_v61 }
 0x323   : > { %v1425_v62 = vpop.eup %1424  ;;  %v841_v0 = vpack.c.bf16 %v1423_v39, %v1419_v17 }
 0x324   : > { %1434 = vpow2.f32 %v775_v40  ;;  %v779_v45 = vmul.f32 1.442695, %v717_v42  ;;  %v781_v44 = vmul.f32 1.442695, %v718_v43  ;;  %v816_v46 = vadd.f32 %v1425_v62, %v1423_v39 }
 0x325   : > { %1436 = vpow2.f32 %v777_v41  ;;  %v842_v22 = vpack.c.bf16 %v1425_v62, %v1421_v37 }
 0x326   : > { %v1427_v47 = vpop.eup %1426  ;;  %1438 = vpow2.f32 %v779_v45  ;;  %817 = vadd.xlane.f32.xlu0 %v816_v46 }
 0x327   : > { %v1429_v23 = vpop.eup %1428  ;;  %1440 = vpow2.f32 %v781_v44  ;;  %921 = vmatprep.mubr.bf16.mxu1 %v842_v22 }
 0x328   : > { %v1431_v51 = vpop.eup %1430  ;;  %922 = vmatmul.mubr.bf16.gmra.mrb[20].mxu1 %v841_v0  ;;  %v819_v53 = vadd.f32 %v1429_v23, %v1427_v47 }
 0x329   : > { %v1433_v24 = vpop.eup %1432  ;;  %v843_v57 = vpack.c.bf16 %v1431_v51, %v1427_v47 }
 0x32a   : > { %820 = vadd.xlane.f32.xlu1 %v819_v53  ;;  %v844_v26 = vpack.c.bf16 %v1433_v24, %v1429_v23  ;;  %v822_v59 = vadd.f32 %v1433_v24, %v1431_v51 }
 0x32c   : > { %929 = vmatprep.mubr.bf16.mxu1 %v844_v26  ;;  %823 = vadd.xlane.f32.xlu0 %v822_v59 }
 0x32e   : > { %v1435_v4 = vpop.eup %1434 }
 0x32f   : > { %v1437_v48 = vpop.eup %1436 }
 0x330   : > { %v1439_v5 = vpop.eup %1438  ;;  %930 = vmatmul.mubr.bf16.gmra.mrb[24].mxu1 %v843_v57  ;;  %v825_v49 = vadd.f32 %v1437_v48, %v1435_v4 }
 0x331   : > { %v1441_v63 = vpop.eup %1440  ;;  %v845_v1 = vpack.c.bf16 %v1439_v5, %v1435_v4 }
 0x332   : > { %826 = vadd.xlane.f32.xlu1 %v825_v49  ;;  %v846_v2 = vpack.c.bf16 %v1441_v63, %v1437_v48  ;;  %v828_v3 = vadd.f32 %v1441_v63, %v1439_v5 }
 0x334   : > { %937 = vmatprep.mubr.bf16.mxu1 %v846_v2  ;;  %829 = vadd.xlane.f32.xlu0 %v828_v3 }
 0x338   : > { %938 = vmatmul.mubr.bf16.gmra.mrb[28].mxu1 %v845_v1 }
 0x387   : > { %v785_v8 = vpop.xlane.xlu1 %784 }
 0x388   : > { %1442 = vrcp.f32 %v785_v8 }
 0x389   : > { %v788_v50 = vpop.xlane.xlu0 %787 }
 0x38a   : > { %1444 = vrcp.f32 %v788_v50 }
 0x38f   : > { %v791_v52 = vpop.xlane.xlu1 %790 }
 0x390   : > { %1446 = vrcp.f32 %v791_v52 }
 0x392   : > { %v1443_v13 = vpop.eup %1442 }
 0x393   : > { %v794_v7 = vpop.xlane.xlu0 %793 }
 0x394   : > { %v1445_v54 = vpop.eup %1444  ;;  %1448 = vrcp.f32 %v794_v7 }
 0x397   : > { %v797_v25 = vpop.xlane.xlu1 %796 }
 0x398   : > { %1450 = vrcp.f32 %v797_v25 }
 0x39a   : > { %v1447_v12 = vpop.eup %1446 }
 0x39b   : > { %v800_v28 = vpop.xlane.xlu0 %799 }
 0x39c   : > { %1452 = vrcp.f32 %v800_v28 }
 0x39e   : > { %v1449_v30 = vpop.eup %1448 }
 0x39f   : > { %v803_v33 = vpop.xlane.xlu1 %802 }
 0x3a0   : > { %1454 = vrcp.f32 %v803_v33 }
 0x3a2   : > { %v1451_v17 = vpop.eup %1450 }
 0x3a3   : > { %v806_v34 = vpop.xlane.xlu0 %805 }
 0x3a4   : > { %1456 = vrcp.f32 %v806_v34 }
 0x3a6   : > { %v1453_v60 = vpop.eup %1452 }
 0x3a7   : > { %v809_v39 = vpop.xlane.xlu1 %808 }
 0x3a8   : > { %1458 = vrcp.f32 %v809_v39  ;;  %v993_v39 = vld [vmem:[%s1630_s6 + $0x18] sm:$0xff] }
 0x3aa   : > { %v1455_v62 = vpop.eup %1454 }
 0x3ab   : > { %v812_v40 = vpop.xlane.xlu0 %811 }
 0x3ac   : > { %1460 = vrcp.f32 %v812_v40 }
 0x3ae   : > { %v1457_v45 = vpop.eup %1456 }
 0x3af   : > { %v815_v23 = vpop.xlane.xlu1 %814 }
 0x3b0   : > { %1462 = vrcp.f32 %v815_v23 }
 0x3b2   : > { %v1459_v26 = vpop.eup %1458 }
 0x3b3   : > { %v818_v51 = vpop.xlane.xlu0 %817 }
 0x3b4   : > { %1464 = vrcp.f32 %v818_v51 }
 0x3b6   : > { %v1461_v4 = vpop.eup %1460 }
 0x3b7   : > { %v821_v1 = vpop.xlane.xlu1 %820 }
 0x3b8   : > { %1466 = vrcp.f32 %v821_v1 }
 0x3b9   : > { %v824_v2 = vpop.xlane.xlu0 %823 }
 0x3ba   : > { %1468 = vrcp.f32 %v824_v2  ;;  %v1463_v50 = vpop.eup %1462 }
 0x3be   : > { %v1465_v7 = vpop.eup %1464 }
 0x3c2   : > { %v1467_v25 = vpop.eup %1466 }
 0x3c4   : > { %v1469_v28 = vpop.eup %1468 }
 0x3d0   : > { %v883_v9 = vpop.f32.mrb[0].mxu1 }
 0x3d1   : > { %v885_v15 = vpop.f32.mrb[1].mxu1  ;;  %v962_v10 = vmul.f32 %v1443_v13, %v883_v9 }
 0x3d2   : > { %v886_v55 = vpop.f32.mrb[2].mxu1 }
 0x3d3   : > { %v963_v19 = vmul.f32 %v1445_v54, %v886_v55  ;;  %v888_v11 = vpop.f32.mrb[3].mxu1  ;;  %v827_v55 = vpop.xlane.xlu1 %826 }
 0x3d4   : > { %1470 = vrcp.f32 %v827_v55 }
 0x3d5   : > { %v978_v21 = vpack.c.bf16 %v963_v19, %v962_v10  ;;  %v830_v10 = vpop.xlane.xlu0 %829 }
 0x3d6   : > { %1472 = vrcp.f32 %v830_v10 }
 0x3d7   : > { %1301 = vmatprep.subr.msk.bf16.mxu0 %vm501_vm1, %v978_v21  ;;  %v1011_v27 = vsel %vm501_vm1, %v978_v21, 0 }
 0x3d8   : > { %1282 = vmatpush3.bf16.xpose.msra.mxu0 %v1011_v27 }
 0x3db   : > { %v891_v29 = vpop.f32.mrb[4].mxu1 }
 0x3dc   : > { %v893_v14 = vpop.f32.mrb[5].mxu1  ;;  %v964_v31 = vmul.f32 %v1447_v12, %v891_v29 }
 0x3dd   : > { %v894_v56 = vpop.f32.mrb[6].mxu1 }
 0x3de   : > { %v965_v58 = vmul.f32 %v1449_v30, %v894_v56  ;;  %v896_v32 = vpop.f32.mrb[7].mxu1 }
 0x3df   : > { %v1471_v32 = vpop.eup %1470 }
 0x3e0   : > { %v979_v35 = vpack.c.bf16 %v965_v58, %v964_v31  ;;  %v1473_v34 = vpop.eup %1472 }
 0x3e2   : > { %1302 = vmatprep.subr.msk.bf16.mxu0 %vm501_vm1, %v979_v35  ;;  %v1014_v36 = vsel %vm501_vm1, %v979_v35, 0 }
 0x3e3   : > { %v899_v16 = vpop.f32.mrb[8].mxu1  ;;  %1284 = vmatpush3.bf16.xpose.msra.mxu0 %v1014_v36 }
 0x3e4   : > { %v901_v37 = vpop.f32.mrb[9].mxu1  ;;  %v966_v20 = vmul.f32 %v1451_v17, %v899_v16 }
 0x3e5   : > { %v902_v18 = vpop.f32.mrb[10].mxu1 }
 0x3e6   : > { %v967_v38 = vmul.f32 %v1453_v60, %v902_v18  ;;  %v904_v61 = vpop.f32.mrb[11].mxu1  ;;  %v1377_v18 = vld [vmem:[%s1848_s3 + $0x8] sm:$0xff]  }
 0x3e8   : > { %v980_v41 = vpack.c.bf16 %v967_v38, %v966_v20  ;;  %v992_v20 = vld [vmem:[%s1630_s6 + $0x10] sm:$0xff]  ;;  %v990_v38 = vld [vmem:[%s1630_s6] sm:$0xff] }
 0x3ea   : > { %1303 = vmatprep.subr.msk.bf16.mxu0 %vm501_vm1, %v980_v41  ;;  %v1017_v42 = vsel %vm501_vm1, %v980_v41, 0 }
 0x3eb   : > { %v907_v43 = vpop.f32.mrb[12].mxu1  ;;  %1286 = vmatpush3.bf16.xpose.msra.mxu0 %v1017_v42  ;;  %v991_v42 = vld [vmem:[%s1630_s6 + $0x8] sm:$0xff]  ;;  %s1095_s6 = sadd.s32 (%p1605_p6), %s1512_s17, %s1266_s15 }
 0x3ec   : > { %v909_v0 = vpop.f32.mrb[13].mxu1  ;;  %v968_v46 = vmul.f32 %v1455_v62, %v907_v43  ;;  %s1267_s8 = sshll.u32 (%p1605_p6), %s1095_s6, 3 }
 0x3ed   : > { %v910_v44 = vpop.f32.mrb[14].mxu1  ;;  %s1097_s11 = scalar_lea.vmem (%p1605_p6), %s1849_s4, %s1267_s8 }
 0x3ee   : > { %v969_v22 = vmul.f32 %v1457_v45, %v910_v44  ;;  %v912_v47 = vpop.f32.mrb[15].mxu1 }
 0x3f0   : > { %v981_v53 = vpack.c.bf16 %v969_v22, %v968_v46 }
 0x3f2   : > { %1304 = vmatprep.subr.msk.bf16.mxu0 %vm501_vm1, %v981_v53  ;;  %v1020_v24 = vsel %vm501_vm1, %v981_v53, 0 }
 0x3f3   : > { %v915_v57 = vpop.f32.mrb[16].mxu1  ;;  %1288 = vmatpush3.bf16.xpose.msra.mxu0 %v1020_v24 }
 0x3f4   : > { %v917_v59 = vpop.f32.mrb[17].mxu1  ;;  %v970_v5 = vmul.f32 %v1459_v26, %v915_v57 }
 0x3f5   : > { %v918_v48 = vpop.f32.mrb[18].mxu1 }
 0x3f6   : > { %v971_v49 = vmul.f32 %v1461_v4, %v918_v48  ;;  %v920_v63 = vpop.f32.mrb[19].mxu1 }
 0x3f8   : > { %v982_v3 = vpack.c.bf16 %v971_v49, %v970_v5 }
 0x3fa   : > { %1305 = vmatprep.subr.msk.bf16.mxu0 %vm501_vm1, %v982_v3  ;;  %v1023_v6 = vsel %vm501_vm1, %v982_v3, 0 }
 0x3fb   : > { %v923_v8 = vpop.f32.mrb[20].mxu1  ;;  %1290 = vmatpush3.bf16.xpose.msra.mxu0 %v1023_v6 }
 0x3fc   : > { %v925_v52 = vpop.f32.mrb[21].mxu1  ;;  %v972_v13 = vmul.f32 %v1463_v50, %v923_v8 }
 0x3fd   : > { %v926_v9 = vpop.f32.mrb[22].mxu1 }
 0x3fe   : > { %v973_v15 = vmul.f32 %v1465_v7, %v926_v9  ;;  %v928_v54 = vpop.f32.mrb[23].mxu1 }
 0x400   : > { %v983_v19 = vpack.c.bf16 %v973_v15, %v972_v13 }
 0x402   : > { %1306 = vmatprep.subr.msk.bf16.mxu0 %vm501_vm1, %v983_v19  ;;  %v1026_v11 = vsel %vm501_vm1, %v983_v19, 0 }
 0x403   : > { %v931_v21 = vpop.f32.mrb[24].mxu1  ;;  %1292 = vmatpush3.bf16.xpose.msra.mxu0 %v1026_v11 }
 0x404   : > { %v933_v27 = vpop.f32.mrb[25].mxu1  ;;  %v974_v12 = vmul.f32 %v1467_v25, %v931_v21 }
 0x405   : > { %v934_v29 = vpop.f32.mrb[26].mxu1 }
 0x406   : > { %v975_v14 = vmul.f32 %v1469_v28, %v934_v29  ;;  %v936_v30 = vpop.f32.mrb[27].mxu1 }
 0x408   : > { %v984_v56 = vpack.c.bf16 %v975_v14, %v974_v12 }
 0x40a   : > { %1307 = vmatprep.subr.msk.bf16.mxu0 %vm501_vm1, %v984_v56  ;;  %v1029_v31 = vsel %vm501_vm1, %v984_v56, 0 }
 0x40b   : > { %v939_v58 = vpop.f32.mrb[28].mxu1  ;;  %1294 = vmatpush3.bf16.xpose.msra.mxu0 %v1029_v31 }
 0x40c   : > { %v941_v33 = vpop.f32.mrb[29].mxu1  ;;  %v976_v36 = vmul.f32 %v1471_v32, %v939_v58 }
 0x40d   : > { %v942_v35 = vpop.f32.mrb[30].mxu1 }
 0x40e   : > { %v977_v16 = vmul.f32 %v1473_v34, %v942_v35  ;;  %v944_v17 = vpop.f32.mrb[31].mxu1 }
 0x410   : > { %v985_v37 = vpack.c.bf16 %v977_v16, %v976_v36 }
 0x412   : > { %1308 = vmatprep.subr.msk.bf16.mxu0 %vm501_vm1, %v985_v37  ;;  %v1032_v60 = vsel %vm501_vm1, %v985_v37, 0 }
 0x413   : > { %1296 = vmatpush3.bf16.xpose.msra.mxu0 %v1032_v60 }
 0x41a   : > { %1298 = vmatmul.mubr.msk.bf16.vlgmr.msra.gmra.mrb[32].mxu0 %vm501_vm1, %v1377_v18 }
 0x4ed   : > { %v1299_v61 = vpop.f32.mrb[32].mxu0  ;;  %1093 = sbr.rel (!%p1605_p6) target bundleno = 1276 (0x4fc), region = 82 }
 0x4ee   : > { %v1077_v40 = vadd.f32 %v1299_v61, %v992_v20  ;;  %v1068_v41 = vpop.f32.mrb[33].mxu0 }
 0x4ef   : > { %v1069_v43 = vadd.f32 %v1068_v41, %v990_v38  ;;  %v1300_v62 = vpop.f32.mrb[34].mxu0 }
 0x4f0   : > { %1085 = vst [vmem:[%s1632_s7 + $0x10] sm:$0xff] %v1077_v40  ;;  %v1080_v0 = vadd.f32 %v1300_v62, %v993_v39  ;;  %v1071_v45 = vpop.f32.mrb[35].mxu0 }
 0x4f1   : > { %1083 = vst [vmem:[%s1632_s7] sm:$0xff] %v1069_v43  ;;  %v1072_v44 = vadd.f32 %v1071_v45, %v991_v42 }
 0x4f2   : > { %1086 = vst [vmem:[%s1632_s7 + $0x18] sm:$0xff] %v1080_v0 }
 0x4f3   : > { %1084 = vst [vmem:[%s1632_s7 + $0x8] sm:$0xff] %v1072_v44 }
 0x4f7   : > { %v1135_v47 = vld [vmem:[%s1632_s7 + $0x10] sm:$0xff] }
 0x4f8   : > { %v1131_v46 = vld [vmem:[%s1632_s7] sm:$0xff]  ;;  %1136 = vst [vmem:[%s1097_s11 + $0x20] sm:$0xff] %v1135_v47 }
 0x4f9   : > { %v1137_v23 = vld [vmem:[%s1632_s7 + $0x18] sm:$0xff]  ;;  %1132 = vst [vmem:[%s1097_s11] sm:$0xff] %v1131_v46 }
 0x4fa   : > { %v1133_v22 = vld [vmem:[%s1632_s7 + $0x8] sm:$0xff]  ;;  %1138 = vst [vmem:[%s1097_s11 + $0x30] sm:$0xff] %v1137_v23 }
 0x4fb   : > { %1134 = vst [vmem:[%s1097_s11 + $0x10] sm:$0xff] %v1133_v22 }
 0x4fc PF: > { %s14_s21 = sadd.s32 1, %s1528_s21   ;;  %s1851_s15 = smov %s1508_s16 }
 0x4fd   : > { %p11_p0 = scmp.ge.s32.totalorder %s14_s21, 6   ;;  %s1852_s16 = smov %s1613_s30 }
 0x4fe   : > { %s1853_s17 = smov %s1520_s19  ;;  %s1854_s18 = smov %s1524_s20 }
 0x4ff   : > { %s1855_s19 = smov %s1858_s22  ;;  %s1856_s20 = smov %s1862_s23 }
 0x500   :  { %13 = sbr.rel (!%p11_p0) target bundleno = 4 (0x4), region = 155 }

</bundles_post_ra>
